<compile_context>
chip_gen: v7x
topology: tpu7x:2x2x1
jax: 0.10.0
libtpu: 0.0.40
codegen_flags: <defaults>
</compile_context>

<pallas_src>
import functools

import jax
import jax.numpy as jnp
import numpy as np
from jax import lax
from jax.experimental import pallas as pl
from jax.experimental.pallas import tpu as pltpu


def _im2col_slab(x2, H, W, not_left, not_right):
    """Build the fused 3x3-tap slab for one image.

    x2: (C, H*W) f32, channel-major, spatially flattened.
    Returns (9*C, H*W); row index = tap*C + c with tap = dy*3 + dx, matching a
    weight matrix reshaped from PyTorch (Cout, Cin, 3, 3) via
    transpose(0, 2, 3, 1) -> (Cout, 9*Cin).  Out-of-image taps are zero
    (conv padding = 1): vertical out-of-range is handled by the zero-filled
    shift, horizontal wrap-around is masked with not_left / not_right.
    """
    C, HW = x2.shape
    taps = []
    for oy in (-1, 0, 1):
        for ox in (-1, 0, 1):
            s = oy * W + ox  # flat-index offset of this tap
            if s > 0:
                sh = jnp.concatenate(
                    [x2[:, s:], jnp.zeros((C, s), jnp.float32)], axis=-1)
            elif s < 0:
                sh = jnp.concatenate(
                    [jnp.zeros((C, -s), jnp.float32), x2[:, :s]], axis=-1)
            else:
                sh = x2
            if ox == -1:
                sh = jnp.where(not_left, sh, 0.0)
            elif ox == 1:
                sh = jnp.where(not_right, sh, 0.0)
            taps.append(sh)
    return jnp.concatenate(taps, axis=0)  # (9*C, HW)


def _combiner_kernel(x_ref, w1_ref, s1_ref, b1_ref, w2_ref, s2_ref, b2_ref,
                     o_ref, *, H, W):
    # x_ref:  (B, Cin, H*W)   channel-major, spatially flattened (lane-dense)
    # w1_ref: (Cin,  9*Cin)   fused 3x3 conv1 weight
    # w2_ref: (Cout, 9*Cin)   fused 3x3 conv2 weight
    # s*/b*:  (C, 1)          folded inference BatchNorm scale / bias
    # o_ref:  (B, Cout, H*W)
    B, Cin, HW = x_ref.shape
    Cout = o_ref.shape[1]

    w1 = w1_ref[...]
    w2 = w2_ref[...]
    s1 = s1_ref[...]
    b1 = b1_ref[...]
    s2 = s2_ref[...]
    b2 = b2_ref[...]

    # Column-coordinate masks for the horizontal boundary taps (shared by both
    # convs and all images in the block).
    col = lax.broadcasted_iota(jnp.int32, (1, HW), 1) % W
    not_left = col != 0
    not_right = col != (W - 1)

    for b in range(B):  # static unroll over the per-step batch block
        x2 = x_ref[b]                                             # (Cin, HW)

        # Conv1: single fused K=9*Cin matmul on the MXU.
        slab1 = _im2col_slab(x2, H, W, not_left, not_right)       # (9*Cin, HW)
        a1 = jnp.dot(w1, slab1, preferred_element_type=jnp.float32)  # (Cin, HW)
        h1 = jnp.maximum(a1, 0.0) * s1 + b1                       # ReLU -> BN

        # Conv2: single fused K=9*Cin matmul.
        slab2 = _im2col_slab(h1, H, W, not_left, not_right)       # (9*Cin, HW)
        a2 = jnp.dot(w2, slab2, preferred_element_type=jnp.float32)  # (Cout, HW)
        h2 = jnp.maximum(a2, 0.0) * s2 + b2

        o_ref[b] = h2.astype(o_ref.dtype)                         # lane-dense store


@jax.jit
def gru_image_space_combiner_block(x_nchw, w1, s1, b1, w2, s2, b2):
    """image_space_real=True forward.  x_nchw: (N, Cin, H, W) f32.

    Returns (N, Cin // 2, H, W) f32.
    """
    N, Cin, H, W = x_nchw.shape
    Cout = w2.shape[0]
    HW = H * W

    # Largest per-step batch block (<= 8) that divides N.
    B = 1
    for cand in range(min(N, 8), 0, -1):
        if N % cand == 0:
            B = cand
            break

    # Free reshape only -- no transpose, no spatial pad.
    x_flat = x_nchw.reshape(N, Cin, HW).astype(jnp.float32)

    kernel = functools.partial(_combiner_kernel, H=H, W=W)

    out = pl.pallas_call(
        kernel,
        out_shape=jax.ShapeDtypeStruct((N, Cout, HW), jnp.float32),
        grid_spec=pltpu.PrefetchScalarGridSpec(
            num_scalar_prefetch=0,
            grid=(N // B,),
            in_specs=[
                pl.BlockSpec((B, Cin, HW), lambda n: (n, 0, 0)),
                pl.BlockSpec((Cin, 9 * Cin), lambda n: (0, 0)),
                pl.BlockSpec((Cin, 1), lambda n: (0, 0)),
                pl.BlockSpec((Cin, 1), lambda n: (0, 0)),
                pl.BlockSpec((Cout, 9 * Cin), lambda n: (0, 0)),
                pl.BlockSpec((Cout, 1), lambda n: (0, 0)),
                pl.BlockSpec((Cout, 1), lambda n: (0, 0)),
            ],
            out_specs=pl.BlockSpec((B, Cout, HW), lambda n: (n, 0, 0)),
        ),
        compiler_params=pltpu.CompilerParams(
            dimension_semantics=("parallel",)),
    )(x_flat, w1, s1, b1, w2, s2, b2)

    return out.reshape(N, Cout, H, W)


def _make_params(in_channels, key):
    """Deterministic parameter init mirroring the module's __init__ shapes."""
    Cin = in_channels
    Cout = in_channels // 2
    eps = 1e-5
    k1, k2, k3, k4, k5, k6 = jax.random.split(key, 6)

    # Conv weights, PyTorch layout (Cout, Cin, 3, 3) -> fused (Cout, 9*Cin)
    # with column index (dy*3 + dx)*Cin + ci.
    w1_t = jax.random.normal(k1, (Cin, Cin, 3, 3), jnp.float32) * 0.1
    w2_t = jax.random.normal(k2, (Cout, Cin, 3, 3), jnp.float32) * 0.1
    w1 = jnp.transpose(w1_t, (0, 2, 3, 1)).reshape(Cin, 9 * Cin)
    w2 = jnp.transpose(w2_t, (0, 2, 3, 1)).reshape(Cout, 9 * Cin)

    # BatchNorm params (inference mode), folded into scale / bias.
    g1 = 1.0 + 0.1 * jax.random.normal(k3, (Cin,), jnp.float32)
    be1 = 0.1 * jax.random.normal(k4, (Cin,), jnp.float32)
    rm1 = 0.05 * jnp.arange(Cin, dtype=jnp.float32)
    rv1 = 1.0 + 0.02 * jnp.arange(Cin, dtype=jnp.float32)
    s1 = g1 / jnp.sqrt(rv1 + eps)
    b1 = be1 - rm1 * s1

    g2 = 1.0 + 0.1 * jax.random.normal(k5, (Cout,), jnp.float32)
    be2 = 0.1 * jax.random.normal(k6, (Cout,), jnp.float32)
    rm2 = 0.05 * jnp.arange(Cout, dtype=jnp.float32)
    rv2 = 1.0 + 0.02 * jnp.arange(Cout, dtype=jnp.float32)
    s2 = g2 / jnp.sqrt(rv2 + eps)
    b2 = be2 - rm2 * s2

    return (w1, s1.reshape(Cin, 1), b1.reshape(Cin, 1),
            w2, s2.reshape(Cout, 1), b2.reshape(Cout, 1))


def _reference(x_nchw, w1, s1, b1, w2, s2, b2):
    """Pure-JAX reference (conv_general_dilated), same folded-BN semantics."""
    N, Cin, H, W = x_nchw.shape
    Cout = w2.shape[0]
    x = jnp.transpose(x_nchw, (0, 2, 3, 1)).astype(jnp.float32)  # NHWC
    # (Cout, 9*Cin) [col = (dy*3+dx)*Cin + ci] -> HWIO (3, 3, Cin, Cout).
    w1_hwio = jnp.transpose(w1.reshape(Cin, 3, 3, Cin), (1, 2, 3, 0))
    w2_hwio = jnp.transpose(w2.reshape(Cout, 3, 3, Cin), (1, 2, 3, 0))
    dn = lax.conv_dimension_numbers(x.shape, w1_hwio.shape,
                                    ("NHWC", "HWIO", "NHWC"))
    h = lax.conv_general_dilated(x, w1_hwio, (1, 1), "SAME",
                                 dimension_numbers=dn)
    h = jnp.maximum(h, 0.0) * s1[:, 0] + b1[:, 0]
    dn2 = lax.conv_dimension_numbers(h.shape, w2_hwio.shape,
                                     ("NHWC", "HWIO", "NHWC"))
    h = lax.conv_general_dilated(h, w2_hwio, (1, 1), "SAME",
                                 dimension_numbers=dn2)
    h = jnp.maximum(h, 0.0) * s2[:, 0] + b2[:, 0]
    return jnp.transpose(h, (0, 3, 1, 2))


if __name__ == "__main__":
    key = jax.random.PRNGKey(0)
    kx, kp = jax.random.split(key)

    N, Cin, H, W = 2, 8, 16, 16  # module default in_channels=8
    x = jax.random.normal(kx, (N, Cin, H, W), jnp.float32)

    params = _make_params(Cin, kp)

    out = jax.block_until_ready(gru_image_space_combiner_block(x, *params))
    ref = jax.block_until_ready(_reference(x, *params))

    np.testing.assert_allclose(np.asarray(out), np.asarray(ref),
                               rtol=1e-4, atol=1e-4)
    assert out.shape == (N, Cin // 2, H, W)

    print("KERNEL_OK")
</pallas_src>

<mosaic_0001>
module attributes {stable_mosaic.version = 11 : i64} {
  func.func @_combiner_kernel(%arg0: i32, %arg1: memref<2x8x256xf32, #tpu.memory_space<vmem>>, %arg2: memref<8x72xf32, #tpu.memory_space<vmem>>, %arg3: memref<8x1xf32, #tpu.memory_space<vmem>>, %arg4: memref<8x1xf32, #tpu.memory_space<vmem>>, %arg5: memref<4x72xf32, #tpu.memory_space<vmem>>, %arg6: memref<4x1xf32, #tpu.memory_space<vmem>>, %arg7: memref<4x1xf32, #tpu.memory_space<vmem>>, %arg8: memref<2x4x256xf32, #tpu.memory_space<vmem>>) attributes {dimension_semantics = [#tpu.dimension_semantics<parallel>], iteration_bounds = array<i64: 1>, scalar_prefetch = 0 : i64, scratch_operands = 0 : i64, tpu.core_type = #tpu.core_type<tc>, window_params = [{transform_indices = @transform_0, window_bounds = array<i64: 2, 8, 256>}, {pipeline_mode = #tpu.pipeline_mode<synchronous>, transform_indices = @transform_1, window_bounds = array<i64: 8, 72>}, {pipeline_mode = #tpu.pipeline_mode<synchronous>, transform_indices = @transform_2, window_bounds = array<i64: 8, 1>}, {pipeline_mode = #tpu.pipeline_mode<synchronous>, transform_indices = @transform_3, window_bounds = array<i64: 8, 1>}, {pipeline_mode = #tpu.pipeline_mode<synchronous>, transform_indices = @transform_4, window_bounds = array<i64: 4, 72>}, {pipeline_mode = #tpu.pipeline_mode<synchronous>, transform_indices = @transform_5, window_bounds = array<i64: 4, 1>}, {pipeline_mode = #tpu.pipeline_mode<synchronous>, transform_indices = @transform_6, window_bounds = array<i64: 4, 1>}, {transform_indices = @transform_7, window_bounds = array<i64: 2, 4, 256>}]} {
    %c0 = arith.constant 0 : index
    %c0_0 = arith.constant 0 : index
    %0 = vector.load %arg2[%c0, %c0_0] : memref<8x72xf32, #tpu.memory_space<vmem>>, vector<8x72xf32>
    %c0_1 = arith.constant 0 : index
    %c0_2 = arith.constant 0 : index
    %1 = vector.load %arg5[%c0_1, %c0_2] : memref<4x72xf32, #tpu.memory_space<vmem>>, vector<4x72xf32>
    %c0_3 = arith.constant 0 : index
    %c0_4 = arith.constant 0 : index
    %2 = vector.load %arg3[%c0_3, %c0_4] : memref<8x1xf32, #tpu.memory_space<vmem>>, vector<8x1xf32>
    %c0_5 = arith.constant 0 : index
    %c0_6 = arith.constant 0 : index
    %3 = vector.load %arg4[%c0_5, %c0_6] : memref<8x1xf32, #tpu.memory_space<vmem>>, vector<8x1xf32>
    %c0_7 = arith.constant 0 : index
    %c0_8 = arith.constant 0 : index
    %4 = vector.load %arg6[%c0_7, %c0_8] : memref<4x1xf32, #tpu.memory_space<vmem>>, vector<4x1xf32>
    %c0_9 = arith.constant 0 : index
    %c0_10 = arith.constant 0 : index
    %5 = vector.load %arg7[%c0_9, %c0_10] : memref<4x1xf32, #tpu.memory_space<vmem>>, vector<4x1xf32>
    %6 = tpu.iota {dimensions = array<i32: 1>} : vector<1x256xi32>
    %c16_i32 = arith.constant 16 : i32
    %c0_i32 = arith.constant 0 : i32
    %7 = arith.cmpi eq, %c16_i32, %c0_i32 : i32
    %c1_i32 = arith.constant 1 : i32
    %8 = arith.select %7, %c1_i32, %c16_i32 : i32
    %9 = vector.broadcast %8 : i32 to vector<1x256xi32>
    %10 = arith.remsi %6, %9 : vector<1x256xi32>
    %c0_i32_11 = arith.constant 0 : i32
    %11 = vector.broadcast %c0_i32_11 : i32 to vector<1x256xi32>
    %12 = arith.cmpi ne, %10, %11 : vector<1x256xi32>
    %c0_i32_12 = arith.constant 0 : i32
    %13 = vector.broadcast %c0_i32_12 : i32 to vector<1x256xi32>
    %14 = arith.cmpi slt, %10, %13 : vector<1x256xi32>
    %c0_i32_13 = arith.constant 0 : i32
    %15 = arith.cmpi slt, %8, %c0_i32_13 : i32
    %16 = vector.broadcast %15 : i1 to vector<1x256xi1>
    %17 = vector.broadcast %16 : vector<1x256xi1> to vector<1x256xi1>
    %18 = arith.xori %14, %17 : vector<1x256xi1>
    %19 = arith.andi %18, %12 : vector<1x256xi1>
    %20 = vector.broadcast %8 : i32 to vector<1x256xi32>
    %21 = arith.addi %10, %20 : vector<1x256xi32>
    %22 = arith.select %19, %21, %10 : vector<1x256xi1>, vector<1x256xi32>
    %c0_i32_14 = arith.constant 0 : i32
    %23 = vector.broadcast %c0_i32_14 : i32 to vector<1x256xi32>
    %24 = arith.cmpi ne, %22, %23 : vector<1x256xi32>
    %c15_i32 = arith.constant 15 : i32
    %25 = vector.broadcast %c15_i32 : i32 to vector<1x256xi32>
    %26 = arith.cmpi ne, %22, %25 : vector<1x256xi32>
    %c0_15 = arith.constant 0 : index
    %c0_16 = arith.constant 0 : index
    %c0_17 = arith.constant 0 : index
    %27 = vector.load %arg1[%c0_15, %c0_16, %c0_17] : memref<2x8x256xf32, #tpu.memory_space<vmem>>, vector<1x8x256xf32>
    %28 = vector.shape_cast %27 : vector<1x8x256xf32> to vector<8x256xf32>
    %cst = arith.constant 0.000000e+00 : f32
    %29 = vector.broadcast %cst : f32 to vector<8x17xf32>
    %30 = vector.extract_strided_slice %28 {offsets = [0, 0], sizes = [8, 239], strides = [1, 1]} : vector<8x256xf32> to vector<8x239xf32>
    %31 = tpu.concatenate %29, %30 in 1 : vector<8x17xf32>, vector<8x239xf32> -> vector<8x256xf32>
    %cst_18 = arith.constant 0.000000e+00 : f32
    %32 = vector.shape_cast %24 : vector<1x256xi1> to vector<1x256xi1>
    %33 = vector.broadcast %32 : vector<1x256xi1> to vector<8x256xi1>
    %34 = vector.broadcast %cst_18 : f32 to vector<8x256xf32>
    %35 = arith.select %33, %31, %34 : vector<8x256xi1>, vector<8x256xf32>
    %cst_19 = arith.constant 0.000000e+00 : f32
    %36 = vector.broadcast %cst_19 : f32 to vector<8x16xf32>
    %37 = vector.extract_strided_slice %28 {offsets = [0, 0], sizes = [8, 240], strides = [1, 1]} : vector<8x256xf32> to vector<8x240xf32>
    %38 = tpu.concatenate %36, %37 in 1 : vector<8x16xf32>, vector<8x240xf32> -> vector<8x256xf32>
    %cst_20 = arith.constant 0.000000e+00 : f32
    %39 = vector.broadcast %cst_20 : f32 to vector<8x15xf32>
    %40 = vector.extract_strided_slice %28 {offsets = [0, 0], sizes = [8, 241], strides = [1, 1]} : vector<8x256xf32> to vector<8x241xf32>
    %41 = tpu.concatenate %39, %40 in 1 : vector<8x15xf32>, vector<8x241xf32> -> vector<8x256xf32>
    %cst_21 = arith.constant 0.000000e+00 : f32
    %42 = vector.shape_cast %26 : vector<1x256xi1> to vector<1x256xi1>
    %43 = vector.broadcast %42 : vector<1x256xi1> to vector<8x256xi1>
    %44 = vector.broadcast %cst_21 : f32 to vector<8x256xf32>
    %45 = arith.select %43, %41, %44 : vector<8x256xi1>, vector<8x256xf32>
    %cst_22 = arith.constant 0.000000e+00 : f32
    %46 = vector.broadcast %cst_22 : f32 to vector<8x1xf32>
    %47 = vector.extract_strided_slice %28 {offsets = [0, 0], sizes = [8, 255], strides = [1, 1]} : vector<8x256xf32> to vector<8x255xf32>
    %48 = tpu.concatenate %46, %47 in 1 : vector<8x1xf32>, vector<8x255xf32> -> vector<8x256xf32>
    %cst_23 = arith.constant 0.000000e+00 : f32
    %49 = vector.shape_cast %24 : vector<1x256xi1> to vector<1x256xi1>
    %50 = vector.broadcast %49 : vector<1x256xi1> to vector<8x256xi1>
    %51 = vector.broadcast %cst_23 : f32 to vector<8x256xf32>
    %52 = arith.select %50, %48, %51 : vector<8x256xi1>, vector<8x256xf32>
    %53 = vector.extract_strided_slice %28 {offsets = [0, 1], sizes = [8, 255], strides = [1, 1]} : vector<8x256xf32> to vector<8x255xf32>
    %cst_24 = arith.constant 0.000000e+00 : f32
    %54 = vector.broadcast %cst_24 : f32 to vector<8x1xf32>
    %55 = tpu.concatenate %53, %54 in 1 : vector<8x255xf32>, vector<8x1xf32> -> vector<8x256xf32>
    %cst_25 = arith.constant 0.000000e+00 : f32
    %56 = vector.shape_cast %26 : vector<1x256xi1> to vector<1x256xi1>
    %57 = vector.broadcast %56 : vector<1x256xi1> to vector<8x256xi1>
    %58 = vector.broadcast %cst_25 : f32 to vector<8x256xf32>
    %59 = arith.select %57, %55, %58 : vector<8x256xi1>, vector<8x256xf32>
    %60 = vector.extract_strided_slice %28 {offsets = [0, 15], sizes = [8, 241], strides = [1, 1]} : vector<8x256xf32> to vector<8x241xf32>
    %cst_26 = arith.constant 0.000000e+00 : f32
    %61 = vector.broadcast %cst_26 : f32 to vector<8x15xf32>
    %62 = tpu.concatenate %60, %61 in 1 : vector<8x241xf32>, vector<8x15xf32> -> vector<8x256xf32>
    %cst_27 = arith.constant 0.000000e+00 : f32
    %63 = vector.shape_cast %24 : vector<1x256xi1> to vector<1x256xi1>
    %64 = vector.broadcast %63 : vector<1x256xi1> to vector<8x256xi1>
    %65 = vector.broadcast %cst_27 : f32 to vector<8x256xf32>
    %66 = arith.select %64, %62, %65 : vector<8x256xi1>, vector<8x256xf32>
    %67 = vector.extract_strided_slice %28 {offsets = [0, 16], sizes = [8, 240], strides = [1, 1]} : vector<8x256xf32> to vector<8x240xf32>
    %cst_28 = arith.constant 0.000000e+00 : f32
    %68 = vector.broadcast %cst_28 : f32 to vector<8x16xf32>
    %69 = tpu.concatenate %67, %68 in 1 : vector<8x240xf32>, vector<8x16xf32> -> vector<8x256xf32>
    %70 = vector.extract_strided_slice %28 {offsets = [0, 17], sizes = [8, 239], strides = [1, 1]} : vector<8x256xf32> to vector<8x239xf32>
    %cst_29 = arith.constant 0.000000e+00 : f32
    %71 = vector.broadcast %cst_29 : f32 to vector<8x17xf32>
    %72 = tpu.concatenate %70, %71 in 1 : vector<8x239xf32>, vector<8x17xf32> -> vector<8x256xf32>
    %cst_30 = arith.constant 0.000000e+00 : f32
    %73 = vector.shape_cast %26 : vector<1x256xi1> to vector<1x256xi1>
    %74 = vector.broadcast %73 : vector<1x256xi1> to vector<8x256xi1>
    %75 = vector.broadcast %cst_30 : f32 to vector<8x256xf32>
    %76 = arith.select %74, %72, %75 : vector<8x256xi1>, vector<8x256xf32>
    %77 = tpu.concatenate %35, %38, %45, %52, %28, %59, %66, %69, %76 in 0 : vector<8x256xf32>, vector<8x256xf32>, vector<8x256xf32>, vector<8x256xf32>, vector<8x256xf32>, vector<8x256xf32>, vector<8x256xf32>, vector<8x256xf32>, vector<8x256xf32> -> vector<72x256xf32>
    %cst_31 = arith.constant dense<0.000000e+00> : vector<8x256xf32>
    %78 = tpu.matmul %0, %77, %cst_31 {dimension_numbers = #tpu.dot_dimension_numbers<[1], [0], [0], [1], [0, 0, 1, 1], [], []>} : vector<8x72xf32>, vector<72x256xf32>, vector<8x256xf32> -> vector<8x256xf32>
    %cst_32 = arith.constant 0.000000e+00 : f32
    %79 = vector.broadcast %cst_32 : f32 to vector<8x256xf32>
    %80 = arith.maximumf %78, %79 : vector<8x256xf32>
    %81 = vector.broadcast %2 : vector<8x1xf32> to vector<8x256xf32>
    %82 = arith.mulf %80, %81 : vector<8x256xf32>
    %83 = vector.broadcast %3 : vector<8x1xf32> to vector<8x256xf32>
    %84 = arith.addf %82, %83 : vector<8x256xf32>
    %cst_33 = arith.constant 0.000000e+00 : f32
    %85 = vector.broadcast %cst_33 : f32 to vector<8x17xf32>
    %86 = vector.extract_strided_slice %84 {offsets = [0, 0], sizes = [8, 239], strides = [1, 1]} : vector<8x256xf32> to vector<8x239xf32>
    %87 = tpu.concatenate %85, %86 in 1 : vector<8x17xf32>, vector<8x239xf32> -> vector<8x256xf32>
    %cst_34 = arith.constant 0.000000e+00 : f32
    %88 = vector.shape_cast %24 : vector<1x256xi1> to vector<1x256xi1>
    %89 = vector.broadcast %88 : vector<1x256xi1> to vector<8x256xi1>
    %90 = vector.broadcast %cst_34 : f32 to vector<8x256xf32>
    %91 = arith.select %89, %87, %90 : vector<8x256xi1>, vector<8x256xf32>
    %cst_35 = arith.constant 0.000000e+00 : f32
    %92 = vector.broadcast %cst_35 : f32 to vector<8x16xf32>
    %93 = vector.extract_strided_slice %84 {offsets = [0, 0], sizes = [8, 240], strides = [1, 1]} : vector<8x256xf32> to vector<8x240xf32>
    %94 = tpu.concatenate %92, %93 in 1 : vector<8x16xf32>, vector<8x240xf32> -> vector<8x256xf32>
    %cst_36 = arith.constant 0.000000e+00 : f32
    %95 = vector.broadcast %cst_36 : f32 to vector<8x15xf32>
    %96 = vector.extract_strided_slice %84 {offsets = [0, 0], sizes = [8, 241], strides = [1, 1]} : vector<8x256xf32> to vector<8x241xf32>
    %97 = tpu.concatenate %95, %96 in 1 : vector<8x15xf32>, vector<8x241xf32> -> vector<8x256xf32>
    %cst_37 = arith.constant 0.000000e+00 : f32
    %98 = vector.shape_cast %26 : vector<1x256xi1> to vector<1x256xi1>
    %99 = vector.broadcast %98 : vector<1x256xi1> to vector<8x256xi1>
    %100 = vector.broadcast %cst_37 : f32 to vector<8x256xf32>
    %101 = arith.select %99, %97, %100 : vector<8x256xi1>, vector<8x256xf32>
    %cst_38 = arith.constant 0.000000e+00 : f32
    %102 = vector.broadcast %cst_38 : f32 to vector<8x1xf32>
    %103 = vector.extract_strided_slice %84 {offsets = [0, 0], sizes = [8, 255], strides = [1, 1]} : vector<8x256xf32> to vector<8x255xf32>
    %104 = tpu.concatenate %102, %103 in 1 : vector<8x1xf32>, vector<8x255xf32> -> vector<8x256xf32>
    %cst_39 = arith.constant 0.000000e+00 : f32
    %105 = vector.shape_cast %24 : vector<1x256xi1> to vector<1x256xi1>
    %106 = vector.broadcast %105 : vector<1x256xi1> to vector<8x256xi1>
    %107 = vector.broadcast %cst_39 : f32 to vector<8x256xf32>
    %108 = arith.select %106, %104, %107 : vector<8x256xi1>, vector<8x256xf32>
    %109 = vector.extract_strided_slice %84 {offsets = [0, 1], sizes = [8, 255], strides = [1, 1]} : vector<8x256xf32> to vector<8x255xf32>
    %cst_40 = arith.constant 0.000000e+00 : f32
    %110 = vector.broadcast %cst_40 : f32 to vector<8x1xf32>
    %111 = tpu.concatenate %109, %110 in 1 : vector<8x255xf32>, vector<8x1xf32> -> vector<8x256xf32>
    %cst_41 = arith.constant 0.000000e+00 : f32
    %112 = vector.shape_cast %26 : vector<1x256xi1> to vector<1x256xi1>
    %113 = vector.broadcast %112 : vector<1x256xi1> to vector<8x256xi1>
    %114 = vector.broadcast %cst_41 : f32 to vector<8x256xf32>
    %115 = arith.select %113, %111, %114 : vector<8x256xi1>, vector<8x256xf32>
    %116 = vector.extract_strided_slice %84 {offsets = [0, 15], sizes = [8, 241], strides = [1, 1]} : vector<8x256xf32> to vector<8x241xf32>
    %cst_42 = arith.constant 0.000000e+00 : f32
    %117 = vector.broadcast %cst_42 : f32 to vector<8x15xf32>
    %118 = tpu.concatenate %116, %117 in 1 : vector<8x241xf32>, vector<8x15xf32> -> vector<8x256xf32>
    %cst_43 = arith.constant 0.000000e+00 : f32
    %119 = vector.shape_cast %24 : vector<1x256xi1> to vector<1x256xi1>
    %120 = vector.broadcast %119 : vector<1x256xi1> to vector<8x256xi1>
    %121 = vector.broadcast %cst_43 : f32 to vector<8x256xf32>
    %122 = arith.select %120, %118, %121 : vector<8x256xi1>, vector<8x256xf32>
    %123 = vector.extract_strided_slice %84 {offsets = [0, 16], sizes = [8, 240], strides = [1, 1]} : vector<8x256xf32> to vector<8x240xf32>
    %cst_44 = arith.constant 0.000000e+00 : f32
    %124 = vector.broadcast %cst_44 : f32 to vector<8x16xf32>
    %125 = tpu.concatenate %123, %124 in 1 : vector<8x240xf32>, vector<8x16xf32> -> vector<8x256xf32>
    %126 = vector.extract_strided_slice %84 {offsets = [0, 17], sizes = [8, 239], strides = [1, 1]} : vector<8x256xf32> to vector<8x239xf32>
    %cst_45 = arith.constant 0.000000e+00 : f32
    %127 = vector.broadcast %cst_45 : f32 to vector<8x17xf32>
    %128 = tpu.concatenate %126, %127 in 1 : vector<8x239xf32>, vector<8x17xf32> -> vector<8x256xf32>
    %cst_46 = arith.constant 0.000000e+00 : f32
    %129 = vector.shape_cast %26 : vector<1x256xi1> to vector<1x256xi1>
    %130 = vector.broadcast %129 : vector<1x256xi1> to vector<8x256xi1>
    %131 = vector.broadcast %cst_46 : f32 to vector<8x256xf32>
    %132 = arith.select %130, %128, %131 : vector<8x256xi1>, vector<8x256xf32>
    %133 = tpu.concatenate %91, %94, %101, %108, %84, %115, %122, %125, %132 in 0 : vector<8x256xf32>, vector<8x256xf32>, vector<8x256xf32>, vector<8x256xf32>, vector<8x256xf32>, vector<8x256xf32>, vector<8x256xf32>, vector<8x256xf32>, vector<8x256xf32> -> vector<72x256xf32>
    %cst_47 = arith.constant dense<0.000000e+00> : vector<4x256xf32>
    %134 = tpu.matmul %1, %133, %cst_47 {dimension_numbers = #tpu.dot_dimension_numbers<[1], [0], [0], [1], [0, 0, 1, 1], [], []>} : vector<4x72xf32>, vector<72x256xf32>, vector<4x256xf32> -> vector<4x256xf32>
    %cst_48 = arith.constant 0.000000e+00 : f32
    %135 = vector.broadcast %cst_48 : f32 to vector<4x256xf32>
    %136 = arith.maximumf %134, %135 : vector<4x256xf32>
    %137 = vector.broadcast %4 : vector<4x1xf32> to vector<4x256xf32>
    %138 = arith.mulf %136, %137 : vector<4x256xf32>
    %139 = vector.broadcast %5 : vector<4x1xf32> to vector<4x256xf32>
    %140 = arith.addf %138, %139 : vector<4x256xf32>
    %c0_49 = arith.constant 0 : index
    %c0_50 = arith.constant 0 : index
    %c0_51 = arith.constant 0 : index
    %141 = vector.load %arg8[%c0_49, %c0_50, %c0_51] : memref<2x4x256xf32, #tpu.memory_space<vmem>>, vector<1x4x256xf32>
    %142 = vector.shape_cast %141 : vector<1x4x256xf32> to vector<4x256xf32>
    %143 = vector.shape_cast %140 : vector<4x256xf32> to vector<1x4x256xf32>
    tpu.vector_store %arg8[%c0_49, %c0_50, %c0_51], %143 {strides = array<i32>} : memref<2x4x256xf32, #tpu.memory_space<vmem>>, vector<1x4x256xf32>,
    %c1 = arith.constant 1 : index
    %c0_52 = arith.constant 0 : index
    %c0_53 = arith.constant 0 : index
    %144 = vector.load %arg1[%c1, %c0_52, %c0_53] : memref<2x8x256xf32, #tpu.memory_space<vmem>>, vector<1x8x256xf32>
    %145 = vector.shape_cast %144 : vector<1x8x256xf32> to vector<8x256xf32>
    %cst_54 = arith.constant 0.000000e+00 : f32
    %146 = vector.broadcast %cst_54 : f32 to vector<8x17xf32>
    %147 = vector.extract_strided_slice %145 {offsets = [0, 0], sizes = [8, 239], strides = [1, 1]} : vector<8x256xf32> to vector<8x239xf32>
    %148 = tpu.concatenate %146, %147 in 1 : vector<8x17xf32>, vector<8x239xf32> -> vector<8x256xf32>
    %cst_55 = arith.constant 0.000000e+00 : f32
    %149 = vector.shape_cast %24 : vector<1x256xi1> to vector<1x256xi1>
    %150 = vector.broadcast %149 : vector<1x256xi1> to vector<8x256xi1>
    %151 = vector.broadcast %cst_55 : f32 to vector<8x256xf32>
    %152 = arith.select %150, %148, %151 : vector<8x256xi1>, vector<8x256xf32>
    %cst_56 = arith.constant 0.000000e+00 : f32
    %153 = vector.broadcast %cst_56 : f32 to vector<8x16xf32>
    %154 = vector.extract_strided_slice %145 {offsets = [0, 0], sizes = [8, 240], strides = [1, 1]} : vector<8x256xf32> to vector<8x240xf32>
    %155 = tpu.concatenate %153, %154 in 1 : vector<8x16xf32>, vector<8x240xf32> -> vector<8x256xf32>
    %cst_57 = arith.constant 0.000000e+00 : f32
    %156 = vector.broadcast %cst_57 : f32 to vector<8x15xf32>
    %157 = vector.extract_strided_slice %145 {offsets = [0, 0], sizes = [8, 241], strides = [1, 1]} : vector<8x256xf32> to vector<8x241xf32>
    %158 = tpu.concatenate %156, %157 in 1 : vector<8x15xf32>, vector<8x241xf32> -> vector<8x256xf32>
    %cst_58 = arith.constant 0.000000e+00 : f32
    %159 = vector.shape_cast %26 : vector<1x256xi1> to vector<1x256xi1>
    %160 = vector.broadcast %159 : vector<1x256xi1> to vector<8x256xi1>
    %161 = vector.broadcast %cst_58 : f32 to vector<8x256xf32>
    %162 = arith.select %160, %158, %161 : vector<8x256xi1>, vector<8x256xf32>
    %cst_59 = arith.constant 0.000000e+00 : f32
    %163 = vector.broadcast %cst_59 : f32 to vector<8x1xf32>
    %164 = vector.extract_strided_slice %145 {offsets = [0, 0], sizes = [8, 255], strides = [1, 1]} : vector<8x256xf32> to vector<8x255xf32>
    %165 = tpu.concatenate %163, %164 in 1 : vector<8x1xf32>, vector<8x255xf32> -> vector<8x256xf32>
    %cst_60 = arith.constant 0.000000e+00 : f32
    %166 = vector.shape_cast %24 : vector<1x256xi1> to vector<1x256xi1>
    %167 = vector.broadcast %166 : vector<1x256xi1> to vector<8x256xi1>
    %168 = vector.broadcast %cst_60 : f32 to vector<8x256xf32>
    %169 = arith.select %167, %165, %168 : vector<8x256xi1>, vector<8x256xf32>
    %170 = vector.extract_strided_slice %145 {offsets = [0, 1], sizes = [8, 255], strides = [1, 1]} : vector<8x256xf32> to vector<8x255xf32>
    %cst_61 = arith.constant 0.000000e+00 : f32
    %171 = vector.broadcast %cst_61 : f32 to vector<8x1xf32>
    %172 = tpu.concatenate %170, %171 in 1 : vector<8x255xf32>, vector<8x1xf32> -> vector<8x256xf32>
    %cst_62 = arith.constant 0.000000e+00 : f32
    %173 = vector.shape_cast %26 : vector<1x256xi1> to vector<1x256xi1>
    %174 = vector.broadcast %173 : vector<1x256xi1> to vector<8x256xi1>
    %175 = vector.broadcast %cst_62 : f32 to vector<8x256xf32>
    %176 = arith.select %174, %172, %175 : vector<8x256xi1>, vector<8x256xf32>
    %177 = vector.extract_strided_slice %145 {offsets = [0, 15], sizes = [8, 241], strides = [1, 1]} : vector<8x256xf32> to vector<8x241xf32>
    %cst_63 = arith.constant 0.000000e+00 : f32
    %178 = vector.broadcast %cst_63 : f32 to vector<8x15xf32>
    %179 = tpu.concatenate %177, %178 in 1 : vector<8x241xf32>, vector<8x15xf32> -> vector<8x256xf32>
    %cst_64 = arith.constant 0.000000e+00 : f32
    %180 = vector.shape_cast %24 : vector<1x256xi1> to vector<1x256xi1>
    %181 = vector.broadcast %180 : vector<1x256xi1> to vector<8x256xi1>
    %182 = vector.broadcast %cst_64 : f32 to vector<8x256xf32>
    %183 = arith.select %181, %179, %182 : vector<8x256xi1>, vector<8x256xf32>
    %184 = vector.extract_strided_slice %145 {offsets = [0, 16], sizes = [8, 240], strides = [1, 1]} : vector<8x256xf32> to vector<8x240xf32>
    %cst_65 = arith.constant 0.000000e+00 : f32
    %185 = vector.broadcast %cst_65 : f32 to vector<8x16xf32>
    %186 = tpu.concatenate %184, %185 in 1 : vector<8x240xf32>, vector<8x16xf32> -> vector<8x256xf32>
    %187 = vector.extract_strided_slice %145 {offsets = [0, 17], sizes = [8, 239], strides = [1, 1]} : vector<8x256xf32> to vector<8x239xf32>
    %cst_66 = arith.constant 0.000000e+00 : f32
    %188 = vector.broadcast %cst_66 : f32 to vector<8x17xf32>
    %189 = tpu.concatenate %187, %188 in 1 : vector<8x239xf32>, vector<8x17xf32> -> vector<8x256xf32>
    %cst_67 = arith.constant 0.000000e+00 : f32
    %190 = vector.shape_cast %26 : vector<1x256xi1> to vector<1x256xi1>
    %191 = vector.broadcast %190 : vector<1x256xi1> to vector<8x256xi1>
    %192 = vector.broadcast %cst_67 : f32 to vector<8x256xf32>
    %193 = arith.select %191, %189, %192 : vector<8x256xi1>, vector<8x256xf32>
    %194 = tpu.concatenate %152, %155, %162, %169, %145, %176, %183, %186, %193 in 0 : vector<8x256xf32>, vector<8x256xf32>, vector<8x256xf32>, vector<8x256xf32>, vector<8x256xf32>, vector<8x256xf32>, vector<8x256xf32>, vector<8x256xf32>, vector<8x256xf32> -> vector<72x256xf32>
    %cst_68 = arith.constant dense<0.000000e+00> : vector<8x256xf32>
    %195 = tpu.matmul %0, %194, %cst_68 {dimension_numbers = #tpu.dot_dimension_numbers<[1], [0], [0], [1], [0, 0, 1, 1], [], []>} : vector<8x72xf32>, vector<72x256xf32>, vector<8x256xf32> -> vector<8x256xf32>
    %cst_69 = arith.constant 0.000000e+00 : f32
    %196 = vector.broadcast %cst_69 : f32 to vector<8x256xf32>
    %197 = arith.maximumf %195, %196 : vector<8x256xf32>
    %198 = vector.broadcast %2 : vector<8x1xf32> to vector<8x256xf32>
    %199 = arith.mulf %197, %198 : vector<8x256xf32>
    %200 = vector.broadcast %3 : vector<8x1xf32> to vector<8x256xf32>
    %201 = arith.addf %199, %200 : vector<8x256xf32>
    %cst_70 = arith.constant 0.000000e+00 : f32
    %202 = vector.broadcast %cst_70 : f32 to vector<8x17xf32>
    %203 = vector.extract_strided_slice %201 {offsets = [0, 0], sizes = [8, 239], strides = [1, 1]} : vector<8x256xf32> to vector<8x239xf32>
    %204 = tpu.concatenate %202, %203 in 1 : vector<8x17xf32>, vector<8x239xf32> -> vector<8x256xf32>
    %cst_71 = arith.constant 0.000000e+00 : f32
    %205 = vector.shape_cast %24 : vector<1x256xi1> to vector<1x256xi1>
    %206 = vector.broadcast %205 : vector<1x256xi1> to vector<8x256xi1>
    %207 = vector.broadcast %cst_71 : f32 to vector<8x256xf32>
    %208 = arith.select %206, %204, %207 : vector<8x256xi1>, vector<8x256xf32>
    %cst_72 = arith.constant 0.000000e+00 : f32
    %209 = vector.broadcast %cst_72 : f32 to vector<8x16xf32>
    %210 = vector.extract_strided_slice %201 {offsets = [0, 0], sizes = [8, 240], strides = [1, 1]} : vector<8x256xf32> to vector<8x240xf32>
    %211 = tpu.concatenate %209, %210 in 1 : vector<8x16xf32>, vector<8x240xf32> -> vector<8x256xf32>
    %cst_73 = arith.constant 0.000000e+00 : f32
    %212 = vector.broadcast %cst_73 : f32 to vector<8x15xf32>
    %213 = vector.extract_strided_slice %201 {offsets = [0, 0], sizes = [8, 241], strides = [1, 1]} : vector<8x256xf32> to vector<8x241xf32>
    %214 = tpu.concatenate %212, %213 in 1 : vector<8x15xf32>, vector<8x241xf32> -> vector<8x256xf32>
    %cst_74 = arith.constant 0.000000e+00 : f32
    %215 = vector.shape_cast %26 : vector<1x256xi1> to vector<1x256xi1>
    %216 = vector.broadcast %215 : vector<1x256xi1> to vector<8x256xi1>
    %217 = vector.broadcast %cst_74 : f32 to vector<8x256xf32>
    %218 = arith.select %216, %214, %217 : vector<8x256xi1>, vector<8x256xf32>
    %cst_75 = arith.constant 0.000000e+00 : f32
    %219 = vector.broadcast %cst_75 : f32 to vector<8x1xf32>
    %220 = vector.extract_strided_slice %201 {offsets = [0, 0], sizes = [8, 255], strides = [1, 1]} : vector<8x256xf32> to vector<8x255xf32>
    %221 = tpu.concatenate %219, %220 in 1 : vector<8x1xf32>, vector<8x255xf32> -> vector<8x256xf32>
    %cst_76 = arith.constant 0.000000e+00 : f32
    %222 = vector.shape_cast %24 : vector<1x256xi1> to vector<1x256xi1>
    %223 = vector.broadcast %222 : vector<1x256xi1> to vector<8x256xi1>
    %224 = vector.broadcast %cst_76 : f32 to vector<8x256xf32>
    %225 = arith.select %223, %221, %224 : vector<8x256xi1>, vector<8x256xf32>
    %226 = vector.extract_strided_slice %201 {offsets = [0, 1], sizes = [8, 255], strides = [1, 1]} : vector<8x256xf32> to vector<8x255xf32>
    %cst_77 = arith.constant 0.000000e+00 : f32
    %227 = vector.broadcast %cst_77 : f32 to vector<8x1xf32>
    %228 = tpu.concatenate %226, %227 in 1 : vector<8x255xf32>, vector<8x1xf32> -> vector<8x256xf32>
    %cst_78 = arith.constant 0.000000e+00 : f32
    %229 = vector.shape_cast %26 : vector<1x256xi1> to vector<1x256xi1>
    %230 = vector.broadcast %229 : vector<1x256xi1> to vector<8x256xi1>
    %231 = vector.broadcast %cst_78 : f32 to vector<8x256xf32>
    %232 = arith.select %230, %228, %231 : vector<8x256xi1>, vector<8x256xf32>
    %233 = vector.extract_strided_slice %201 {offsets = [0, 15], sizes = [8, 241], strides = [1, 1]} : vector<8x256xf32> to vector<8x241xf32>
    %cst_79 = arith.constant 0.000000e+00 : f32
    %234 = vector.broadcast %cst_79 : f32 to vector<8x15xf32>
    %235 = tpu.concatenate %233, %234 in 1 : vector<8x241xf32>, vector<8x15xf32> -> vector<8x256xf32>
    %cst_80 = arith.constant 0.000000e+00 : f32
    %236 = vector.shape_cast %24 : vector<1x256xi1> to vector<1x256xi1>
    %237 = vector.broadcast %236 : vector<1x256xi1> to vector<8x256xi1>
    %238 = vector.broadcast %cst_80 : f32 to vector<8x256xf32>
    %239 = arith.select %237, %235, %238 : vector<8x256xi1>, vector<8x256xf32>
    %240 = vector.extract_strided_slice %201 {offsets = [0, 16], sizes = [8, 240], strides = [1, 1]} : vector<8x256xf32> to vector<8x240xf32>
    %cst_81 = arith.constant 0.000000e+00 : f32
    %241 = vector.broadcast %cst_81 : f32 to vector<8x16xf32>
    %242 = tpu.concatenate %240, %241 in 1 : vector<8x240xf32>, vector<8x16xf32> -> vector<8x256xf32>
    %243 = vector.extract_strided_slice %201 {offsets = [0, 17], sizes = [8, 239], strides = [1, 1]} : vector<8x256xf32> to vector<8x239xf32>
    %cst_82 = arith.constant 0.000000e+00 : f32
    %244 = vector.broadcast %cst_82 : f32 to vector<8x17xf32>
    %245 = tpu.concatenate %243, %244 in 1 : vector<8x239xf32>, vector<8x17xf32> -> vector<8x256xf32>
    %cst_83 = arith.constant 0.000000e+00 : f32
    %246 = vector.shape_cast %26 : vector<1x256xi1> to vector<1x256xi1>
    %247 = vector.broadcast %246 : vector<1x256xi1> to vector<8x256xi1>
    %248 = vector.broadcast %cst_83 : f32 to vector<8x256xf32>
    %249 = arith.select %247, %245, %248 : vector<8x256xi1>, vector<8x256xf32>
    %250 = tpu.concatenate %208, %211, %218, %225, %201, %232, %239, %242, %249 in 0 : vector<8x256xf32>, vector<8x256xf32>, vector<8x256xf32>, vector<8x256xf32>, vector<8x256xf32>, vector<8x256xf32>, vector<8x256xf32>, vector<8x256xf32>, vector<8x256xf32> -> vector<72x256xf32>
    %cst_84 = arith.constant dense<0.000000e+00> : vector<4x256xf32>
    %251 = tpu.matmul %1, %250, %cst_84 {dimension_numbers = #tpu.dot_dimension_numbers<[1], [0], [0], [1], [0, 0, 1, 1], [], []>} : vector<4x72xf32>, vector<72x256xf32>, vector<4x256xf32> -> vector<4x256xf32>
    %cst_85 = arith.constant 0.000000e+00 : f32
    %252 = vector.broadcast %cst_85 : f32 to vector<4x256xf32>
    %253 = arith.maximumf %251, %252 : vector<4x256xf32>
    %254 = vector.broadcast %4 : vector<4x1xf32> to vector<4x256xf32>
    %255 = arith.mulf %253, %254 : vector<4x256xf32>
    %256 = vector.broadcast %5 : vector<4x1xf32> to vector<4x256xf32>
    %257 = arith.addf %255, %256 : vector<4x256xf32>
    %c1_86 = arith.constant 1 : index
    %c0_87 = arith.constant 0 : index
    %c0_88 = arith.constant 0 : index
    %258 = vector.load %arg8[%c1_86, %c0_87, %c0_88] : memref<2x4x256xf32, #tpu.memory_space<vmem>>, vector<1x4x256xf32>
    %259 = vector.shape_cast %258 : vector<1x4x256xf32> to vector<4x256xf32>
    %260 = vector.shape_cast %257 : vector<4x256xf32> to vector<1x4x256xf32>
    tpu.vector_store %arg8[%c1_86, %c0_87, %c0_88], %260 {strides = array<i32>} : memref<2x4x256xf32, #tpu.memory_space<vmem>>, vector<1x4x256xf32>,
    return
  }
  func.func @transform_0(%arg0: i32) -> (i32, i32, i32) {
    %c0_i32 = arith.constant 0 : i32
    %c0_i32_0 = arith.constant 0 : i32
    %c0_i32_1 = arith.constant 0 : i32
    return %arg0, %c0_i32, %c0_i32_0 : i32, i32, i32
  }
  func.func @transform_1(%arg0: i32) -> (i32, i32) {
    %c0_i32 = arith.constant 0 : i32
    %c0_i32_0 = arith.constant 0 : i32
    %c0_i32_1 = arith.constant 0 : i32
    return %c0_i32, %c0_i32_0 : i32, i32
  }
  func.func @transform_2(%arg0: i32) -> (i32, i32) {
    %c0_i32 = arith.constant 0 : i32
    %c0_i32_0 = arith.constant 0 : i32
    %c0_i32_1 = arith.constant 0 : i32
    return %c0_i32, %c0_i32_0 : i32, i32
  }
  func.func @transform_3(%arg0: i32) -> (i32, i32) {
    %c0_i32 = arith.constant 0 : i32
    %c0_i32_0 = arith.constant 0 : i32
    %c0_i32_1 = arith.constant 0 : i32
    return %c0_i32, %c0_i32_0 : i32, i32
  }
  func.func @transform_4(%arg0: i32) -> (i32, i32) {
    %c0_i32 = arith.constant 0 : i32
    %c0_i32_0 = arith.constant 0 : i32
    %c0_i32_1 = arith.constant 0 : i32
    return %c0_i32, %c0_i32_0 : i32, i32
  }
  func.func @transform_5(%arg0: i32) -> (i32, i32) {
    %c0_i32 = arith.constant 0 : i32
    %c0_i32_0 = arith.constant 0 : i32
    %c0_i32_1 = arith.constant 0 : i32
    return %c0_i32, %c0_i32_0 : i32, i32
  }
  func.func @transform_6(%arg0: i32) -> (i32, i32) {
    %c0_i32 = arith.constant 0 : i32
    %c0_i32_0 = arith.constant 0 : i32
    %c0_i32_1 = arith.constant 0 : i32
    return %c0_i32, %c0_i32_0 : i32, i32
  }
  func.func @transform_7(%arg0: i32) -> (i32, i32, i32) {
    %c0_i32 = arith.constant 0 : i32
    %c0_i32_0 = arith.constant 0 : i32
    %c0_i32_1 = arith.constant 0 : i32
    return %arg0, %c0_i32, %c0_i32_0 : i32, i32, i32
  }
}

</mosaic_0001>

<bundles_post_ra>
// kernel: gru_image_space_combiner_block.1
= control target key start
LH: loop header
LB: loop body
LE: loop exit
PB: predicated region body
PF: predicated region fallthrough
CT: control target
= control target key end

     0   :  { %s1062_s28 = smov 15   ;;  %s1063_s29 = smov 17   ;;  %v1070_v7 = vmov 0.0   ;;  %v1071_v9 = vmov 0   ;;  %v32_v12 = vlaneseq  ;;  %vm1462_vm0 = vcmask 121856   ;;  %s1451_s0 = inlined_call_operand.vmem [shape: f32[2,8,256], index: 0, kind: input, shape index: {}]   ;;  %s1452_s2 = inlined_call_operand.vmem [shape: f32[8,1], index: 2, kind: input, shape index: {}]   ;;  %s1453_s3 = inlined_call_operand.vmem [shape: f32[8,1], index: 3, kind: input, shape index: {}]   ;;  %s1454_s1 = inlined_call_operand.vmem [shape: f32[8,72], index: 1, kind: input, shape index: {}]   ;;  %s1455_s5 = inlined_call_operand.vmem [shape: f32[4,1], index: 5, kind: input, shape index: {}]   ;;  %s1456_s6 = inlined_call_operand.vmem [shape: f32[4,1], index: 6, kind: input, shape index: {}]   ;;  %s1457_s4 = inlined_call_operand.vmem [shape: f32[4,72], index: 4, kind: input, shape index: {}]   ;;  %s1458_s7 = inlined_call_operand.vmem [shape: f32[2,4,256], index: 7, kind: output, shape index: {}]  }
   0x1   :  { %v1116_v0 = vld [vmem:[%s1451_s0] sm:$0xff]  ;;  %v1121_v1 = vld [vmem:[%s1451_s0 + $0x8] sm:$0xff]  ;;  %s1064_s30 = smov 1   ;;  %s1065_s8 = smov 16   ;;  %v1136_v4 = vld [vmem:[%s1451_s0 + $0x10] sm:$0xff]  ;;  %227 = vmatprep.mubr.f32.mxu0 %v1070_v7  ;;  %395 = vmatprep.mubr.f32.mxu1 %v1070_v7  ;;  %vm1464_vm1 = vcmask 138240  }
   0x2   :  { %v930_v2 = vpack.i.bf16 %v1121_v1, %v1116_v0  ;;  %v940_v3 = vpack.i.bf16 %v1116_v0, %v1121_v1  ;;  %s1066_s9 = smov 127   ;;  %s1067_s10 = smov 113   ;;  %v1141_v5 = vld [vmem:[%s1451_s0 + $0x18] sm:$0xff]  ;;  %990 = vset.pattern.permute.xlu0 %v1071_v9  ;;  %v28_v10 = vld [vmem:[%s1452_s2] sm:$0xff]  ;;  %991 = vset.pattern.permute.xlu1 %v1071_v9  ;;  %v33_v13 = vand.u32 127, %v32_v12  ;;  %vm1460_vm2 = vcmask 7168  }
   0x3   :  { %s1068_s15 = smov 112   ;;  %s1069_s16 = smov 111   ;;  %v955_v6 = vpack.i.bf16 %v1141_v5, %v1136_v4  ;;  %v975_v8 = vpack.i.bf16 %v1136_v4, %v1141_v5  ;;  %v29_v11 = vld [vmem:[%s1453_s3] sm:$0xff]  ;;  %vm1463_vm4 = vcmask 130048   ;;  %vm1072_vm8 = vmmov 1  }
   0x4   :  { %931 = vrot.lane.b32.xlu1 %v930_v2, %s1062_s28  ;;  %921 = vrot.lane.b32.xlu0 %v930_v2, %s1063_s29  ;;  %v34_v14 = vadd.s32 128, %v33_v13  ;;  %v39_v18 = vand.u32 15, %v33_v13  ;;  %vm748_vm6 = vmneg %vm1463_vm4  ;;  %vm1459_vm10 = vcmask 1039360   ;;  %vm1461_vm14 = vcmask 924672  }
   0x5   :  { %vm1465_vm15 = vcmask 916480  }
   0x6   :  { %v46_v17 = vand.u32 15, %v34_v14  ;;  %vm1175_vm5 = vcmp.ne.s32.totalorder %v39_v18, 0  ;;  %vm1196_vm11 = vcmp.ne.s32.totalorder %v39_v18, 15 }
   0x7   :  { %vm1202_vm12 = vmpackc.low %vm748_vm6, %vm1175_vm5 }
   0x8   :  { %936 = vrot.lane.b32.xlu1 %v930_v2, %s1064_s30  ;;  %926 = vrot.lane.b32.xlu0 %v930_v2, %s1065_s8  ;;  %vm1171_vm3 = vcmp.ne.s32.totalorder %v46_v17, 0  ;;  %vm1180_vm7 = vcmp.ne.s32.totalorder %v46_v17, 15  ;;  %vm1229_vm6 = vmpackc.low %vm1175_vm5, %vm1196_vm11 }
   0x9   :  { %vm1191_vm9 = vmpackc.low %vm1072_vm8, %vm1171_vm3 }
   0xa   :  { %vm1210_vm13 = vmpackc.low %vm1171_vm3, %vm1180_vm7 }
   0xc   :  { %941 = vrot.lane.b32.xlu0 %v940_v3, %s1066_s9  ;;  %946 = vrot.lane.b32.xlu1 %v940_v3, %s1067_s10 }
  0x10   :  { %951 = vrot.lane.b32.xlu0 %v930_v2, %s1068_s15  ;;  %150 = vrot.lane.b32.xlu1 %v1121_v1, %s1069_s16 }
  0x14   :  { %956 = vrot.lane.b32.xlu0 %v955_v6, %s1063_s29  ;;  %961 = vrot.lane.b32.xlu1 %v955_v6, %s1065_s8 }
  0x18   :  { %148 = vrot.lane.b32.xlu0 %v1116_v0, %s1069_s16  ;;  %966 = vrot.lane.b32.xlu1 %v955_v6, %s1062_s28 }
  0x1c   :  { %971 = vrot.lane.b32.xlu0 %v955_v6, %s1064_s30  ;;  %976 = vrot.lane.b32.xlu1 %v975_v8, %s1066_s9 }
  0x20   :  { %981 = vrot.lane.b32.xlu0 %v975_v8, %s1067_s10  ;;  %986 = vrot.lane.b32.xlu1 %v955_v6, %s1068_s15 }
  0x24   :  { %496 = vrot.lane.b32.xlu0 %v1141_v5, %s1069_s16  ;;  %494 = vrot.lane.b32.xlu1 %v1136_v4, %s1069_s16 }
  0x28   :  { %238 = vperm.xlu0 %990, %v28_v10   ;;  %245 = vperm.xlu1 %991, %v29_v11  }
  0x76   :  { %v932_v15 = vpop.permute.xlu1 %931  ;;  %v922_v16 = vpop.permute.xlu0 %921 }
  0x77   :  { %v934_v19 = vunpack.i.h.bf16 %v932_v15  ;;  %v933_v20 = vunpack.i.l.bf16 %v932_v15  ;;  %v924_v21 = vunpack.i.h.bf16 %v922_v16  ;;  %v923_v22 = vunpack.i.l.bf16 %v922_v16 }
  0x79   :  { %v96_v32 = vsel %vm1462_vm0, %v933_v20, %v934_v19  ;;  %v72_v34 = vsel %vm1464_vm1, %v923_v22, %v924_v21  ;;  %v75_v37 = vsel %vm1464_vm1, 0.0, %v923_v22  ;;  %v99_v48 = vsel %vm1462_vm0, 0.0, %v933_v20 }
  0x7a   :  { %v937_v23 = vpop.permute.xlu1 %936  ;;  %v927_v24 = vpop.permute.xlu0 %926  ;;  %vm152_vm0 = vcmask 908288  }
  0x7b   :  { %v939_v27 = vunpack.i.h.bf16 %v937_v23  ;;  %v938_v28 = vunpack.i.l.bf16 %v937_v23  ;;  %v929_v29 = vunpack.i.h.bf16 %v927_v24  ;;  %v928_v30 = vunpack.i.l.bf16 %v927_v24 }
  0x7d   :  { %v111_v33 = vsel %vm1460_vm2, %v938_v28, %v939_v27  ;;  %v87_v35 = vsel %vm1463_vm4, %v928_v30, %v929_v29  ;;  %v816_v43 = vpack.c.bf16 %v928_v30, %v75_v37  ;;  %v114_v49 = vsel %vm1460_vm2, 0.0, %v938_v28  ;;  %vm1251_vm2 = vmpackc.low %vm1196_vm11, %vm1072_vm8  ;;  %v26_v29 = vld [vmem:[%s1454_s1] sm:$0xff] }
  0x7e   :  { %v942_v38 = vpop.permute.xlu0 %941  ;;  %v813_v39 = vpack.c.bf16 %v87_v35, %v72_v34  ;;  %v947_v42 = vpop.permute.xlu1 %946  ;;  %v819_v50 = vpack.c.bf16 %v111_v33, %v96_v32  ;;  %v822_v58 = vpack.c.bf16 %v114_v49, %v99_v48 }
  0x7f   :  { %v944_v44 = vunpack.i.h.bf16 %v942_v38  ;;  %v943_v45 = vunpack.i.l.bf16 %v942_v38  ;;  %v948_v46 = vunpack.i.l.bf16 %v947_v42  ;;  %v949_v52 = vunpack.i.h.bf16 %v947_v42 }
  0x80   :  { %815 = vmatprep.subr.msk.bf16.mxu0 %vm1191_vm9, %v813_v39 }
  0x81   :  { %v125_v51 = vsel %vm1459_vm10, %v943_v45, 0.0  ;;  %818 = vmatpush1.bf16.msk.msra.mxu0 %vm1202_vm12, %v816_v43  ;;  %v122_v53 = vsel %vm1459_vm10, %v944_v44, %v943_v45  ;;  %v136_v59 = vsel %vm1461_vm14, %v948_v46, 0.0  ;;  %vm1237_vm10 = vmpackc.low %vm1180_vm7, %vm1072_vm8 }
  0x82   :  { %v825_v54 = vpack.c.bf16 %v125_v51, %v1121_v1  ;;  %v952_v55 = vpop.permute.xlu0 %951  ;;  %821 = vmatprep.subr.msk.bf16.mxu0 %vm1210_vm13, %v819_v50  ;;  %v151_v57 = vpop.permute.xlu1 %150  ;;  %v828_v63 = vpack.c.bf16 %v122_v53, %v1116_v0  ;;  %v133_v1 = vsel %vm1461_vm14, %v949_v52, %v948_v46  ;;  %vm1258_vm14 = vmpackc.low %vm1465_vm15, %vm1171_vm3 }
  0x83   :  { %v954_v60 = vunpack.i.h.bf16 %v952_v55  ;;  %v953_v61 = vunpack.i.l.bf16 %v952_v55  ;;  %vm1269_vm3 = vmpackc.low %vm1072_vm8, %vm1175_vm5  ;;  %v156_v20 = vsel %vm152_vm0, %v151_v57, 0.0  ;;  %vm1491_vm5 = vcmask 121856  }
  0x84   :  { %vm1466_vm8 = vcmask 588800  }
  0x85   :  { %v144_v2 = vsel %vm1465_vm15, %v953_v61, %v954_v60  ;;  %824 = vmatpush1.bf16.msk.msra.mxu0 %vm1229_vm6, %v822_v58  ;;  %v831_v3 = vpack.c.bf16 %v954_v60, %v136_v59  ;;  %vm1495_vm15 = vcmask 1039360  }
  0x86   :  { %v957_v6 = vpop.permute.xlu0 %956  ;;  %827 = vmatprep.subr.msk.bf16.mxu0 %vm1237_vm10, %v825_v54  ;;  %v962_v0 = vpop.permute.xlu1 %961  ;;  %v834_v10 = vpack.c.bf16 %v144_v2, %v133_v1 }
  0x87   :  { %v959_v11 = vunpack.i.h.bf16 %v957_v6  ;;  %v958_v12 = vunpack.i.l.bf16 %v957_v6  ;;  %v964_v13 = vunpack.i.h.bf16 %v962_v0  ;;  %v963_v14 = vunpack.i.l.bf16 %v962_v0 }
  0x89   :  { %830 = vmatpush1.bf16.msk.msra.mxu0 %vm1251_vm2, %v828_v63  ;;  %v432_v21 = vsel %vm1464_vm1, %v958_v12, %v959_v11  ;;  %v442_v22 = vsel %vm1463_vm4, %v963_v14, %v964_v13  ;;  %v435_v23 = vsel %vm1464_vm1, 0.0, %v958_v12  ;;  %vm1492_vm4 = vmmov %vm1491_vm5  ;;  %vm1493_vm1 = vcmask 7168  }
  0x8a   :  { %v149_v15 = vpop.permute.xlu0 %148  ;;  %833 = vmatprep.subr.msk.bf16.mxu0 %vm1258_vm14, %v831_v3  ;;  %v967_v17 = vpop.permute.xlu1 %966  ;;  %v861_v33 = vpack.c.bf16 %v442_v22, %v432_v21  ;;  %v864_v37 = vpack.c.bf16 %v963_v14, %v435_v23 }
  0x8b   :  { %v969_v18 = vunpack.i.h.bf16 %v967_v17  ;;  %v968_v19 = vunpack.i.l.bf16 %v967_v17  ;;  %v153_v34 = vsel %vm152_vm0, %v149_v15, %v151_v57 }
  0x8d   :  { %836 = vmatpush1.bf16.msk.msra.mxu0 %vm1269_vm3, %v834_v10  ;;  %v450_v24 = vsel %vm1491_vm5, %v968_v19, %v969_v18  ;;  %v453_v35 = vsel %vm1492_vm4, 0.0, %v968_v19  ;;  %vm1494_vm5 = vmmov %vm1493_vm1  ;;  %vm1497_vm4 = vcmask 924672  }
  0x8e   :  { %759 = vmatprep.subr.msk.mxu0 %vm1180_vm7, %v156_v20  ;;  %v972_v25 = vpop.permute.xlu0 %971  ;;  %v977_v26 = vpop.permute.xlu1 %976 }
  0x8f   :  { %v974_v27 = vunpack.i.h.bf16 %v972_v25  ;;  %v973_v28 = vunpack.i.l.bf16 %v972_v25  ;;  %v979_v30 = vunpack.i.h.bf16 %v977_v26  ;;  %v978_v32 = vunpack.i.l.bf16 %v977_v26 }
  0x91   :  { %v460_v38 = vsel %vm1493_vm1, %v973_v28, %v974_v27  ;;  %v463_v39 = vsel %vm1494_vm5, 0.0, %v973_v28  ;;  %760 = vmatpush1.msk.msra.mxu0 %vm1196_vm11, %v153_v34  ;;  %v473_v42 = vsel %vm1495_vm15, %v978_v32, 0.0  ;;  %vm1496_vm1 = vmmov %vm1495_vm15  ;;  %vm1499_vm5 = vcmask 916480   ;;  %v30_v28 = vld [vmem:[%s1455_s5] sm:$0xf] }
  0x92   :  { %v867_v43 = vpack.c.bf16 %v460_v38, %v450_v24  ;;  %761 = vmatmul.mubr.msk.f32.vlgmr.msra.gmra.mrb[0].mxu0 %vm1466_vm8, %v26_v29  ;;  %863 = vmatprep.subr.msk.bf16.mxu0 %vm1191_vm9, %v861_v33  ;;  %v982_v44 = vpop.permute.xlu0 %981  ;;  %v987_v45 = vpop.permute.xlu1 %986  ;;  %v870_v46 = vpack.c.bf16 %v463_v39, %v453_v35  ;;  %v470_v48 = vsel %vm1496_vm1, %v979_v30, %v978_v32  ;;  %vm1498_vm15 = vmmov %vm1497_vm4  ;;  %vm1500_vm1 = vcmask 138240  }
  0x93   :  { %866 = vmatpush1.bf16.msk.msra.mxu0 %vm1202_vm12, %v864_v37  ;;  %v983_v49 = vunpack.i.l.bf16 %v982_v44  ;;  %568 = vmatprep.mubr.f32.mxu0 %v1070_v7  ;;  %v873_v50 = vpack.c.bf16 %v473_v42, %v1141_v5  ;;  %v984_v51 = vunpack.i.h.bf16 %v982_v44  ;;  %v989_v52 = vunpack.i.h.bf16 %v987_v45 }
  0x94   :  { %869 = vmatprep.subr.msk.bf16.mxu0 %vm1210_vm13, %v867_v43  ;;  %v988_v53 = vunpack.i.l.bf16 %v987_v45  ;;  %v876_v55 = vpack.c.bf16 %v470_v48, %v1136_v4 }
  0x95   :  { %v483_v54 = vsel %vm1497_vm4, %v983_v49, 0.0  ;;  %v480_v57 = vsel %vm1498_vm15, %v984_v51, %v983_v49  ;;  %vm1501_vm4 = vmmov %vm1500_vm1  ;;  %vm1502_vm15 = vcmask 130048  }
  0x96   :  { %v490_v58 = vsel %vm1499_vm5, %v988_v53, %v989_v52  ;;  %v879_v59 = vpack.c.bf16 %v989_v52, %v483_v54  ;;  %v497_v5 = vpop.permute.xlu0 %496  ;;  %v495_v61 = vpop.permute.xlu1 %494  ;;  %vm1503_vm5 = vcmask 7168  }
  0x97   :  { %872 = vmatpush1.bf16.msk.msra.mxu0 %vm1229_vm6, %v870_v46  ;;  %v882_v60 = vpack.c.bf16 %v490_v58, %v480_v57  ;;  %v501_v4 = vsel %vm152_vm0, %v497_v5, 0.0  ;;  %v498_v63 = vsel %vm152_vm0, %v495_v61, %v497_v5 }
  0x98   :  { %875 = vmatprep.subr.msk.bf16.mxu0 %vm1237_vm10, %v873_v50 }
  0x9b   :  { %878 = vmatpush1.bf16.msk.msra.mxu0 %vm1251_vm2, %v876_v55 }
  0x9c   :  { %881 = vmatprep.subr.msk.bf16.mxu0 %vm1258_vm14, %v879_v59 }
  0x9f   :  { %884 = vmatpush1.bf16.msk.msra.mxu0 %vm1269_vm3, %v882_v60 }
  0xa0   :  { %793 = vmatprep.subr.msk.mxu0 %vm1180_vm7, %v501_v4 }
  0xa3   :  { %794 = vmatpush1.msk.msra.mxu0 %vm1196_vm11, %v498_v63 }
  0xa4   :  { %795 = vmatmul.mubr.msk.f32.vlgmr.msra.gmra.mrb[2].mxu0 %vm1466_vm8, %v26_v29  ;;  %v31_v29 = vld [vmem:[%s1456_s6] sm:$0xf]  ;;  %vm1504_vm8 = vmmov %vm1503_vm5 }
  0xa7   :  { %v239_v2 = vpop.permute.xlu0 %238  ;;  %v246_v10 = vpop.permute.xlu1 %245 }
 0x165   :  { %v229_v1 = vpop.f32.mrb[0].mxu0 }
 0x166   :  { %v234_v3 = vmax.f32 %v229_v1, 0.0  ;;  %v231_v6 = vpop.f32.mrb[1].mxu0 }
 0x167   :  { %v235_v0 = vmax.f32 %v231_v6, 0.0 }
 0x168   :  { %v241_v11 = vmul.f32 %v239_v2, %v234_v3 }
 0x169   :  { %v242_v12 = vmul.f32 %v239_v2, %v235_v0 }
 0x16a   :  { %v1323_v13 = vadd.f32 %v246_v10, %v241_v11 }
 0x16b   :  { %v1325_v14 = vadd.f32 %v246_v10, %v242_v12 }
 0x16d   :  { %v997_v15 = vpack.i.bf16 %v1325_v14, %v1323_v13  ;;  %v1017_v17 = vpack.i.bf16 %v1323_v13, %v1325_v14 }
 0x16f   :  { %998 = vrot.lane.b32.xlu0 %v997_v15, %s1065_s8  ;;  %993 = vrot.lane.b32.xlu1 %v997_v15, %s1063_s29 }
 0x173   :  { %1008 = vrot.lane.b32.xlu0 %v997_v15, %s1064_s30  ;;  %1003 = vrot.lane.b32.xlu1 %v997_v15, %s1062_s28 }
 0x177   :  { %v570_v18 = vpop.f32.mrb[2].mxu0  ;;  %1018 = vrot.lane.b32.xlu0 %v1017_v17, %s1067_s10  ;;  %1013 = vrot.lane.b32.xlu1 %v1017_v17, %s1066_s9 }
 0x178   :  { %v575_v19 = vmax.f32 %v570_v18, 0.0  ;;  %v572_v20 = vpop.f32.mrb[3].mxu0 }
 0x179   :  { %v576_v21 = vmax.f32 %v572_v20, 0.0 }
 0x17a   :  { %v577_v22 = vmul.f32 %v575_v19, %v239_v2 }
 0x17b   :  { %v578_v23 = vmul.f32 %v576_v21, %v239_v2  ;;  %320 = vrot.lane.b32.xlu0 %v1325_v14, %s1069_s16  ;;  %1023 = vrot.lane.b32.xlu1 %v997_v15, %s1068_s15 }
 0x17c   :  { %v1340_v24 = vadd.f32 %v577_v22, %v246_v10 }
 0x17d   :  { %v1342_v25 = vadd.f32 %v578_v23, %v246_v10 }
 0x17f   :  { %318 = vrot.lane.b32.xlu1 %v1323_v13, %s1069_s16  ;;  %v1032_v26 = vpack.i.bf16 %v1342_v25, %v1340_v24  ;;  %v1047_v27 = vpack.i.bf16 %v1340_v24, %v1342_v25 }
 0x181   :  { %1033 = vrot.lane.b32.xlu0 %v1032_v26, %s1065_s8 }
 0x183   :  { %1028 = vrot.lane.b32.xlu1 %v1032_v26, %s1063_s29 }
 0x185   :  { %1038 = vrot.lane.b32.xlu0 %v1032_v26, %s1062_s28 }
 0x187   :  { %1043 = vrot.lane.b32.xlu1 %v1032_v26, %s1064_s30 }
 0x189   :  { %1048 = vrot.lane.b32.xlu0 %v1047_v27, %s1066_s9 }
 0x18b   :  { %1053 = vrot.lane.b32.xlu1 %v1047_v27, %s1067_s10 }
 0x18d   :  { %1058 = vrot.lane.b32.xlu0 %v1032_v26, %s1068_s15 }
 0x18f   :  { %651 = vrot.lane.b32.xlu1 %v1342_v25, %s1069_s16 }
 0x191   :  { %649 = vrot.lane.b32.xlu0 %v1340_v24, %s1069_s16 }
 0x193   :  { %406 = vperm.xlu1 %991, %v30_v28  }
 0x195   :  { %413 = vperm.xlu0 %990, %v31_v29   ;;  %v27_v29 = vld [vmem:[%s1457_s4] sm:$0xf] }
 0x1e1   :  { %v999_v30 = vpop.permute.xlu0 %998  ;;  %v994_v32 = vpop.permute.xlu1 %993 }
 0x1e2   :  { %v1001_v33 = vunpack.i.h.bf16 %v999_v30  ;;  %v1000_v34 = vunpack.i.l.bf16 %v999_v30  ;;  %v996_v35 = vunpack.i.h.bf16 %v994_v32  ;;  %v995_v37 = vunpack.i.l.bf16 %v994_v32 }
 0x1e4   :  { %v259_v38 = vsel %vm1500_vm1, 0.0, %v995_v37  ;;  %v256_v39 = vsel %vm1501_vm4, %v995_v37, %v996_v35  ;;  %v266_v42 = vsel %vm1502_vm15, %v1000_v34, %v1001_v33  ;;  %vm1505_vm1 = vcmask 121856  }
 0x1e5   :  { %v1009_v43 = vpop.permute.xlu0 %1008  ;;  %v1004_v44 = vpop.permute.xlu1 %1003  ;;  %v837_v45 = vpack.c.bf16 %v266_v42, %v256_v39  ;;  %v840_v46 = vpack.c.bf16 %v1000_v34, %v259_v38  ;;  %vm1506_vm4 = vmmov %vm1505_vm1  ;;  %vm1507_vm15 = vcmask 1039360  }
 0x1e6   :  { %v1011_v48 = vunpack.i.h.bf16 %v1009_v43  ;;  %v1010_v49 = vunpack.i.l.bf16 %v1009_v43  ;;  %v1006_v50 = vunpack.i.h.bf16 %v1004_v44  ;;  %v1005_v51 = vunpack.i.l.bf16 %v1004_v44 }
 0x1e7   :  { %839 = vmatprep.subr.msk.bf16.mxu1 %vm1191_vm9, %v837_v45 }
 0x1e8   :  { %v284_v52 = vsel %vm1503_vm5, %v1010_v49, %v1011_v48  ;;  %v287_v53 = vsel %vm1504_vm8, 0.0, %v1010_v49  ;;  %v274_v54 = vsel %vm1505_vm1, %v1005_v51, %v1006_v50  ;;  %v277_v55 = vsel %vm1506_vm4, 0.0, %v1005_v51  ;;  %842 = vmatpush1.bf16.msk.msra.mxu1 %vm1202_vm12, %v840_v46  ;;  %vm1508_vm8 = vmmov %vm1507_vm15 }
 0x1e9   :  { %v843_v57 = vpack.c.bf16 %v284_v52, %v274_v54  ;;  %v846_v58 = vpack.c.bf16 %v287_v53, %v277_v55  ;;  %v1019_v59 = vpop.permute.xlu0 %1018  ;;  %v1014_v5 = vpop.permute.xlu1 %1013  ;;  %vm1509_vm5 = vcmask 924672   ;;  %vm1511_vm4 = vcmask 916480  }
 0x1ea   :  { %v1016_v60 = vunpack.i.h.bf16 %v1014_v5  ;;  %v1015_v4 = vunpack.i.l.bf16 %v1014_v5  ;;  %v1020_v61 = vunpack.i.l.bf16 %v1019_v59  ;;  %v1021_v63 = vunpack.i.h.bf16 %v1019_v59  ;;  %vm1510_vm1 = vmmov %vm1509_vm5 }
 0x1eb   :  { %845 = vmatprep.subr.msk.bf16.mxu1 %vm1210_vm13, %v843_v57 }
 0x1ec   :  { %v294_v1 = vsel %vm1507_vm15, %v1016_v60, %v1015_v4  ;;  %v297_v2 = vsel %vm1508_vm8, %v1015_v4, 0.0  ;;  %848 = vmatpush1.bf16.msk.msra.mxu1 %vm1229_vm6, %v846_v58  ;;  %v307_v12 = vsel %vm1509_vm5, %v1020_v61, 0.0  ;;  %v304_v17 = vsel %vm1510_vm1, %v1021_v63, %v1020_v61 }
 0x1ed   :  { %v849_v3 = vpack.c.bf16 %v297_v2, %v1325_v14  ;;  %v852_v6 = vpack.c.bf16 %v294_v1, %v1323_v13  ;;  %v1024_v0 = vpop.permute.xlu1 %1023  ;;  %v321_v15 = vpop.permute.xlu0 %320  ;;  %vm1512_vm15 = vcmask 130048   ;;  %vm1513_vm8 = vcmask 138240  }
 0x1ee   :  { %v1026_v10 = vunpack.i.h.bf16 %v1024_v0  ;;  %v1025_v11 = vunpack.i.l.bf16 %v1024_v0  ;;  %v325_v21 = vsel %vm152_vm0, %v321_v15, 0.0  ;;  %vm1514_vm5 = vmmov %vm1513_vm8  ;;  %vm1515_vm1 = vcmask 588800  }
 0x1ef   :  { %851 = vmatprep.subr.msk.bf16.mxu1 %vm1237_vm10, %v849_v3 }
 0x1f0   :  { %v855_v18 = vpack.c.bf16 %v1026_v10, %v307_v12  ;;  %v314_v19 = vsel %vm1511_vm4, %v1025_v11, %v1026_v10  ;;  %854 = vmatpush1.bf16.msk.msra.mxu1 %vm1251_vm2, %v852_v6  ;;  %vm1516_vm4 = vcmask 121856  }
 0x1f1   :  { %v858_v14 = vpack.c.bf16 %v314_v19, %v304_v17  ;;  %v319_v20 = vpop.permute.xlu1 %318 }
 0x1f2   :  { %857 = vmatprep.subr.msk.bf16.mxu1 %vm1258_vm14, %v855_v18  ;;  %v322_v30 = vsel %vm152_vm0, %v319_v20, %v321_v15 }
 0x1f3   :  { %v1034_v13 = vpop.permute.xlu0 %1033 }
 0x1f4   :  { %v1036_v22 = vunpack.i.h.bf16 %v1034_v13  ;;  %v1035_v23 = vunpack.i.l.bf16 %v1034_v13  ;;  %860 = vmatpush1.bf16.msk.msra.mxu1 %vm1269_vm3, %v858_v14 }
 0x1f5   :  { %v1029_v26 = vpop.permute.xlu1 %1028  ;;  %775 = vmatprep.subr.msk.mxu1 %vm1180_vm7, %v325_v21 }
 0x1f6   :  { %v1031_v27 = vunpack.i.h.bf16 %v1029_v26  ;;  %v1030_v28 = vunpack.i.l.bf16 %v1029_v26  ;;  %v597_v32 = vsel %vm1512_vm15, %v1035_v23, %v1036_v22  ;;  %vm1517_vm15 = vmmov %vm1516_vm4 }
 0x1f7   :  { %v1039_v33 = vpop.permute.xlu0 %1038 }
 0x1f8   :  { %v587_v34 = vsel %vm1513_vm8, %v1030_v28, %v1031_v27  ;;  %v590_v35 = vsel %vm1514_vm5, 0.0, %v1030_v28  ;;  %v1041_v37 = vunpack.i.h.bf16 %v1039_v33  ;;  %v1040_v38 = vunpack.i.l.bf16 %v1039_v33  ;;  %776 = vmatpush1.msk.msra.mxu1 %vm1196_vm11, %v322_v30 }
 0x1f9   :  { %v885_v39 = vpack.c.bf16 %v597_v32, %v587_v34  ;;  %v888_v42 = vpack.c.bf16 %v1035_v23, %v590_v35  ;;  %v1044_v43 = vpop.permute.xlu1 %1043  ;;  %777 = vmatmul.mubr.msk.f32.vlgmr.msra.gmra.mrb[0].mxu1 %vm1515_vm1, %v27_v29  ;;  %vm1518_vm8 = vcmask 7168   ;;  %vm1520_vm1 = vcmask 1039360  }
 0x1fa   :  { %v1046_v44 = vunpack.i.h.bf16 %v1044_v43  ;;  %v1045_v45 = vunpack.i.l.bf16 %v1044_v43  ;;  %723 = vmatprep.mubr.f32.mxu1 %v1070_v7  ;;  %v605_v46 = vsel %vm1516_vm4, %v1040_v38, %v1041_v37  ;;  %v608_v48 = vsel %vm1517_vm15, 0.0, %v1040_v38  ;;  %vm1519_vm5 = vmmov %vm1518_vm8 }
 0x1fb   :  { %v1049_v49 = vpop.permute.xlu0 %1048  ;;  %887 = vmatprep.subr.msk.bf16.mxu1 %vm1191_vm9, %v885_v39  ;;  %vm1521_vm4 = vmmov %vm1520_vm1  ;;  %vm1522_vm9 = vcmask 924672  }
 0x1fc   :  { %v615_v50 = vsel %vm1518_vm8, %v1045_v45, %v1046_v44  ;;  %v618_v51 = vsel %vm1519_vm5, 0.0, %v1045_v45  ;;  %v1051_v52 = vunpack.i.h.bf16 %v1049_v49  ;;  %v1050_v53 = vunpack.i.l.bf16 %v1049_v49  ;;  %890 = vmatpush1.bf16.msk.msra.mxu1 %vm1202_vm12, %v888_v42 }
 0x1fd   :  { %v891_v54 = vpack.c.bf16 %v615_v50, %v605_v46  ;;  %v894_v55 = vpack.c.bf16 %v618_v51, %v608_v48  ;;  %v1054_v7 = vpop.permute.xlu1 %1053  ;;  %vm1523_vm12 = vcmask 916480  }
 0x1fe   :  { %v628_v57 = vsel %vm1520_vm1, %v1050_v53, 0.0  ;;  %v1055_v58 = vunpack.i.l.bf16 %v1054_v7  ;;  %v625_v59 = vsel %vm1521_vm4, %v1051_v52, %v1050_v53  ;;  %v1056_v41 = vunpack.i.h.bf16 %v1054_v7 }
 0x1ff   :  { %v897_v36 = vpack.c.bf16 %v628_v57, %v1342_v25  ;;  %v1059_v5 = vpop.permute.xlu0 %1058  ;;  %893 = vmatprep.subr.msk.bf16.mxu1 %vm1210_vm13, %v891_v54  ;;  %v900_v63 = vpack.c.bf16 %v625_v59, %v1340_v24  ;;  %vm1524_vm13 = vmmov %vm1522_vm9 }
 0x200   :  { %v638_v60 = vsel %vm1522_vm9, %v1055_v58, 0.0  ;;  %v1061_v4 = vunpack.i.h.bf16 %v1059_v5  ;;  %v1060_v61 = vunpack.i.l.bf16 %v1059_v5  ;;  %896 = vmatpush1.bf16.msk.msra.mxu1 %vm1229_vm6, %v894_v55  ;;  %v635_v47 = vsel %vm1524_vm13, %v1056_v41, %v1055_v58 }
 0x201   :  { %899 = vmatprep.subr.msk.bf16.mxu1 %vm1237_vm10, %v897_v36  ;;  %v652_v2 = vpop.permute.xlu1 %651 }
 0x202   :  { %v903_v1 = vpack.c.bf16 %v1061_v4, %v638_v60  ;;  %v645_v25 = vsel %vm1523_vm12, %v1060_v61, %v1061_v4  ;;  %v656_v3 = vsel %vm152_vm0, %v652_v2, 0.0 }
 0x203   :  { %v906_v56 = vpack.c.bf16 %v645_v25, %v635_v47  ;;  %v650_v6 = vpop.permute.xlu0 %649 }
 0x204   :  { %902 = vmatpush1.bf16.msk.msra.mxu1 %vm1251_vm2, %v900_v63  ;;  %v653_v62 = vsel %vm152_vm0, %v650_v6, %v652_v2  ;;  %vm1525_vm2 = vcmask 588800  }
 0x205   :  { %905 = vmatprep.subr.msk.bf16.mxu1 %vm1258_vm14, %v903_v1 }
 0x208   :  { %908 = vmatpush1.bf16.msk.msra.mxu1 %vm1269_vm3, %v906_v56 }
 0x209   :  { %809 = vmatprep.subr.msk.mxu1 %vm1180_vm7, %v656_v3 }
 0x20c   :  { %810 = vmatpush1.msk.msra.mxu1 %vm1196_vm11, %v653_v62 }
 0x20d   :  { %811 = vmatmul.mubr.msk.f32.vlgmr.msra.gmra.mrb[2].mxu1 %vm1525_vm2, %v27_v29 }
 0x212   :  { %v407_v0 = vpop.permute.xlu1 %406 }
 0x214   :  { %v414_v12 = vpop.permute.xlu0 %413 }
 0x2cc   :  { %v397_v8 = vpop.f32.mrb[0].mxu1 }
 0x2cd   :  { %v402_v9 = vmax.f32 %v397_v8, 0.0  ;;  %v399_v24 = vpop.f32.mrb[1].mxu1 }
 0x2ce   :  { %v403_v10 = vmax.f32 %v399_v24, 0.0 }
 0x2cf   :  { %v409_v11 = vmul.f32 %v407_v0, %v402_v9 }
 0x2d0   :  { %v410_v15 = vmul.f32 %v407_v0, %v403_v10 }
 0x2d1   :  { %v416_v16 = vadd.f32 %v414_v12, %v409_v11 }
 0x2d2   :  { %v417_v17 = vadd.f32 %v414_v12, %v410_v15 }
 0x2d4   :  { %v420_v18 = vcombine.low %v416_v16, %v417_v17 }
 0x2d6   :  { %422 = vst [vmem:[%s1458_s7] sm:$0xff] %v420_v18 }
 0x2e0   :  { %v725_v31 = vpop.f32.mrb[2].mxu1 }
 0x2e1   :  { %v730_v40 = vmax.f32 %v725_v31, 0.0  ;;  %v727_v19 = vpop.f32.mrb[3].mxu1 }
 0x2e2   :  { %v731_v14 = vmax.f32 %v727_v19, 0.0 }
 0x2e3   :  { %v732_v20 = vmul.f32 %v730_v40, %v407_v0 }
 0x2e4   :  { %v733_v13 = vmul.f32 %v731_v14, %v407_v0 }
 0x2e5   :  { %v734_v21 = vadd.f32 %v732_v20, %v414_v12 }
 0x2e6   :  { %v735_v22 = vadd.f32 %v733_v13, %v414_v12 }
 0x2e8   :  { %v738_v23 = vcombine.low %v734_v21, %v735_v22 }
 0x2ea   :  { %812 = vst [vmem:[%s1458_s7 + $0x8] sm:$0xff] %v738_v23 }

</bundles_post_ra>
